<compile_context>
chip_gen: v7x
topology: tpu7x:2x2x1
jax: 0.10.0
libtpu: 0.0.40
codegen_flags: <defaults>
</compile_context>

<pallas_src>
import jax
import jax.numpy as jnp
from jax.experimental import pallas as pl
from jax.experimental.pallas import tpu as pltpu


def _hbm_copy_kernel(x_hbm, o_hbm, sem):
    """Single full-array HBM->HBM DMA copy (no VMEM staging, no grid)."""
    cp = pltpu.make_async_copy(x_hbm, o_hbm, sem)
    cp.start()
    cp.wait()


def _pallas_identity_copy(x: jax.Array) -> jax.Array:
    """Materialized identity copy via one direct HBM->HBM DMA."""
    return pl.pallas_call(
        _hbm_copy_kernel,
        out_shape=jax.ShapeDtypeStruct(x.shape, x.dtype),
        in_specs=[pl.BlockSpec(memory_space=pl.ANY)],   # raw HBM ref, no auto-DMA
        out_specs=pl.BlockSpec(memory_space=pl.ANY),    # raw HBM ref, written by DMA
        scratch_shapes=[pltpu.SemaphoreType.DMA],       # completion semaphore
    )(x)


def base_network_forward(x: jax.Array, *, materialize: bool = False) -> jax.Array:
    """Forward pass of BaseNetwork: identity (no parameters defined).

    Fast path (default) returns the input unchanged — an identity needs no
    kernel and no HBM traffic.  `materialize=True` runs the HBM->HBM DMA copy
    kernel instead, producing a distinct output buffer.
    """
    if not materialize:
        return x
    return _pallas_identity_copy(x)


def base_network_summary() -> int:
    """Mirror of BaseNetwork.summary(): count of trainable parameters (none)."""
    params = 0  # BaseNetwork.__init__ registers no nn.Parameters.
    return params


if __name__ == "__main__":
    key = jax.random.PRNGKey(0)
    # Small NCHW input consistent with a conv-style network: [N=2, C=4, H=16, W=16]
    x = jax.random.normal(key, (2, 4, 16, 16), dtype=jnp.float32)

    # Fast path: identity forward, no kernel launch.
    y_fast = jax.block_until_ready(base_network_forward(x))

    # Materialized-copy path: exercises the HBM->HBM DMA Pallas kernel.
    y_kernel = jax.block_until_ready(base_network_forward(x, materialize=True))

    # Correctness checks against the (identity) reference semantics.
    assert y_fast.shape == x.shape and y_fast.dtype == x.dtype
    assert y_kernel.shape == x.shape and y_kernel.dtype == x.dtype
    assert bool(jnp.allclose(y_fast, x)), "identity fast-path mismatch"
    assert bool(jnp.allclose(y_kernel, x)), "identity kernel mismatch"
    assert base_network_summary() == 0

    print("KERNEL_OK")
</pallas_src>

<mosaic_0001>
module attributes {stable_mosaic.version = 11 : i64} {
  func.func @_hbm_copy_kernel(%arg0: memref<2x4x16x16xf32, #tpu.memory_space<any>>, %arg1: memref<2x4x16x16xf32, #tpu.memory_space<any>>, %arg2: memref<!tpu.dma_semaphore, #tpu.memory_space<semaphore_mem>>) attributes {dimension_semantics = [], scalar_prefetch = 0 : i64, scratch_operands = 1 : i64, tpu.core_type = #tpu.core_type<tc>} {
    tpu.enqueue_dma source(%arg0 : memref<2x4x16x16xf32, #tpu.memory_space<any>>) target(%arg1 : memref<2x4x16x16xf32, #tpu.memory_space<any>>) target_semaphore(%arg2 : memref<!tpu.dma_semaphore, #tpu.memory_space<semaphore_mem>>)
    tpu.wait_dma2 semaphore(%arg2 : memref<!tpu.dma_semaphore, #tpu.memory_space<semaphore_mem>>) src(%arg0 : memref<2x4x16x16xf32, #tpu.memory_space<any>>) dst(%arg1 : memref<2x4x16x16xf32, #tpu.memory_space<any>>)
    return
  }
}

</mosaic_0001>

<bundles_post_ra>
// kernel: tpu_custom_call.1
= control target key start
LH: loop header
LB: loop body
LE: loop exit
PB: predicated region body
PF: predicated region fallthrough
CT: control target
= control target key end

     0   :  { %s36_s6 = smov [#allocation2]   ;;  %s37_s7 = smov [#allocation3]   ;;  %s55_s0 = inlined_call_operand.hbm [shape: f32[2,4,16,16], index: 0, kind: input, shape index: {}]   ;;  %s56_s1 = inlined_call_operand.hbm [shape: f32[2,4,16,16], index: 1, kind: output, shape index: {}]  }
   0x1   :  { %s38_s8 = smov 0  }
   0x2   :  { %18 = dma.general %s55_s0, 2048, %s56_s1, %s36_s6, %s37_s7, [#allocation4], %s38_s8, 0  }
   0x3   :  { %34 = dma.done.wait [#allocation2], 2048 }
   0x4   :  { %35 = vsyncadd [#allocation2], 4294965248 }
   0x5   :  { %24 = vsyncmov [#allocation2] }
   0x8   :  { %s25_s13 = vpop.sfrf %24 }
   0x9   :  { %p30_p0 = scmp.ne.s32.totalorder %s25_s13, 0 }
   0xb   :  { %29 = shalt.err (%p30_p0)  }

</bundles_post_ra>
